<compile_context>
chip_gen: v7x
topology: tpu7x:2x2x1
jax: 0.10.0
libtpu: 0.0.40
codegen_flags: <defaults>
</compile_context>

<pallas_src>
import jax
import jax.numpy as jnp
from jax.experimental import pallas as pl
from jax.experimental.pallas import tpu as pltpu

EPS = 1e-5


# ---------------------------------------------------------------------------
# Kernel
# ---------------------------------------------------------------------------
def temporal_sg_kernel(x_ref, dw1w_ref, dw1b_ref, pww_ref, pwb_ref,
                       dw2w_ref, dw2b_ref, out_ref, buf_ref):
    NB, T, VC = x_ref.shape
    K = dw1w_ref.shape[0]
    P = (K - 1) // 2
    LANE = pww_ref.shape[0]          # 128-lane chunk (or VC in the fallback path)
    G = VC // LANE                   # number of lane groups sharing the same weight chunk

    # Zero the temporal halo rows of the padded scratch (cheap: 2*P sublanes per step; kept
    # per-step so megacore "parallel" sharding stays safe).
    if P > 0:
        zeros_pad = jnp.zeros((NB, P, VC), jnp.float32)
        buf_ref[:, 0:P, :] = zeros_pad
        buf_ref[:, P + T:T + 2 * P, :] = zeros_pad

    def depthwise(w_ref, b_ref):
        # out[:, t, :] = sum_k w[k, :] * buf[:, t + k, :]; data lives at rows [P, P+T).
        w = w_ref[...]                               # (K, VC) — tiny, load once
        acc = buf_ref[:, 0:T, :] * w[0]              # init with tap k=0 (no zeros materialization)
        for k in range(1, K):                        # static unroll over remaining taps
            acc = acc + buf_ref[:, k:k + T, :] * w[k]
        return acc + b_ref[0, :]

    # --- depthwise temporal conv 1 (+ folded BN) + ReLU ------------------------------------
    buf_ref[:, P:P + T, :] = x_ref[...].astype(jnp.float32)
    y = jnp.maximum(depthwise(dw1w_ref, dw1b_ref), 0.0)

    # --- fused pointwise conv (C -> Ci -> C), tiled into 128-lane diagonal chunks + ReLU ----
    # The same (LANE, LANE) block-diagonal weight chunk applies to every lane group, so one
    # weight load is amortized over G * NB * T LHS rows.  Results are written straight into the
    # T-padded scratch (interior), which the second depthwise conv then consumes.
    w_pw = pww_ref[...]                              # (LANE, LANE) bf16
    b_pw = pwb_ref[0, :]                             # (LANE,) f32
    for g in range(G):
        y_g = y[:, :, g * LANE:(g + 1) * LANE].reshape(NB * T, LANE).astype(w_pw.dtype)
        y2_g = jnp.dot(y_g, w_pw, preferred_element_type=jnp.float32)
        y2_g = jnp.maximum(y2_g + b_pw, 0.0)
        buf_ref[:, P:P + T, g * LANE:(g + 1) * LANE] = y2_g.reshape(NB, T, LANE)

    # --- depthwise temporal conv 2 (+ folded BN), stride 1 ----------------------------------
    y = depthwise(dw2w_ref, dw2b_ref)

    # --- residual add (re-read x to keep vreg pressure low) ---------------------------------
    out_ref[...] = (y + x_ref[...].astype(jnp.float32)).astype(out_ref.dtype)


# ---------------------------------------------------------------------------
# Parameter packing: lane-dense (V*C) depthwise weights + fused pointwise weight chunk
# ---------------------------------------------------------------------------
def pack_params_lane_dense(params, V, C, lane=128):
    dw1w, dw1b, pw1w, pw1b, pw2w, pw2b, dw2w, dw2b = params
    VC = V * C
    # Depthwise per-channel weights/biases tiled across V joints -> (K, V*C) / (1, V*C).
    dw1w_vc = jnp.tile(dw1w, (1, V))
    dw1b_vc = jnp.tile(dw1b, (1, V))
    dw2w_vc = jnp.tile(dw2w, (1, V))
    dw2b_vc = jnp.tile(dw2b, (1, V))
    # Fuse pointwise conv1 (BN folded) and conv2 into a single CxC matmul (valid: no activation
    # between them, eval-mode BN).
    w_fused = pw1w @ pw2w                                        # (C, C)
    b_fused = pw1b @ pw2w + pw2b                                 # (1, C)
    if VC % lane == 0 and lane % C == 0:
        # One (lane, lane) block-diagonal chunk reused for every 128-lane group of V*C.
        rep = lane // C
        w_pw = jnp.kron(jnp.eye(rep, dtype=w_fused.dtype), w_fused)   # (lane, lane)
        b_pw = jnp.tile(b_fused, (1, rep))                            # (1, lane)
    else:
        # Fallback: full block-diagonal (kernel handles it as a single chunk).
        w_pw = jnp.kron(jnp.eye(V, dtype=w_fused.dtype), w_fused)     # (VC, VC)
        b_pw = jnp.tile(b_fused, (1, V))                              # (1, VC)
    # bf16 MXU operands, f32 bias/accumulation.
    return dw1w_vc, dw1b_vc, w_pw.astype(jnp.bfloat16), b_pw, dw2w_vc, dw2b_vc


# ---------------------------------------------------------------------------
# Batch-block heuristic: stay within a per-block VMEM budget AND keep >= 2 grid steps
# (v7x megacore + DMA/compute pipelining) whenever the batch allows it.
# ---------------------------------------------------------------------------
def _choose_batch_block(N, T, VC, target_bytes=2 << 20):
    divisors = [d for d in range(1, N + 1) if N % d == 0]
    fits = [d for d in divisors if d * T * VC * 4 <= target_bytes] or [1]
    multi = [d for d in fits if N // d >= 2]
    cands = multi if multi else fits
    return max(cands)


# ---------------------------------------------------------------------------
# Wrapper
# ---------------------------------------------------------------------------
def temporal_sg_layer(x_ntvc, params, batch_block=None):
    N, T, V, C = x_ntvc.shape
    VC = V * C
    assert VC % 128 == 0, "lane-dense layout requires V*C to be a multiple of 128"
    x_flat = x_ntvc.reshape(N, T, VC)          # lane-dense layout: (v, c) fused on lane axis

    dw1w, dw1b, pww, pwb, dw2w, dw2b = pack_params_lane_dense(params, V, C)
    K = dw1w.shape[0]
    LANE = pww.shape[0]

    nb = _choose_batch_block(N, T, VC) if batch_block is None else batch_block
    assert N % nb == 0, "batch_block must divide N"
    grid = (N // nb,)

    def pspec(shape):
        return pl.BlockSpec(shape, lambda n: (0,) * len(shape))

    # VMEM budget: double-buffered x/out blocks + padded scratch + (double-buffered) weights.
    blk_bytes = nb * T * VC * 4
    buf_bytes = nb * (T + K - 1) * VC * 4
    w_bytes = 2 * (K * VC * 4) + 2 * (VC * 4) + LANE * LANE * 2 + LANE * 4
    vmem_need = 2 * blk_bytes * 2 + buf_bytes + 2 * w_bytes
    vmem_limit = int(min(max(2 * vmem_need, 4 << 20), 48 << 20))

    # Advisory cost estimate for XLA scheduling around the custom call.
    flops = 2 * N * T * VC * LANE + 2 * (2 * K * N * T * VC)
    bytes_accessed = 2 * N * T * VC * 4 + 2 * K * VC * 4 + 2 * VC * 4 + LANE * LANE * 2 + LANE * 4
    cost = pl.CostEstimate(flops=int(flops), transcendentals=0,
                           bytes_accessed=int(bytes_accessed))

    out = pl.pallas_call(
        temporal_sg_kernel,
        out_shape=jax.ShapeDtypeStruct((N, T, VC), x_ntvc.dtype),
        grid_spec=pltpu.PrefetchScalarGridSpec(
            num_scalar_prefetch=0,
            grid=grid,
            in_specs=[
                pl.BlockSpec((nb, T, VC), lambda n: (n, 0, 0)),    # x
                pspec((K, VC)), pspec((1, VC)),                    # depthwise 1 (folded BN)
                pspec((LANE, LANE)), pspec((1, LANE)),             # fused pointwise chunk (bf16)
                pspec((K, VC)), pspec((1, VC)),                    # depthwise 2 (folded BN)
            ],
            out_specs=pl.BlockSpec((nb, T, VC), lambda n: (n, 0, 0)),
            scratch_shapes=[pltpu.VMEM((nb, T + (K - 1), VC), jnp.float32)],  # T-padded buf
        ),
        compiler_params=pltpu.CompilerParams(
            dimension_semantics=("parallel",),
            vmem_limit_bytes=vmem_limit),
        cost_estimate=cost,
    )(x_flat, dw1w, dw1b, pww, pwb, dw2w, dw2b)
    return out.reshape(N, T, V, C)


# ---------------------------------------------------------------------------
# Parameter construction (deterministic) + BN folding (eval mode)
# ---------------------------------------------------------------------------
def make_params(key, channel, temporal_window_size, reduct_ratio):
    inner = channel // reduct_ratio
    K = temporal_window_size
    keys = jax.random.split(key, 24)

    def rnd(k, shape, scale=0.1):
        return scale * jax.random.normal(k, shape, jnp.float32)

    # raw conv weights/bias in PyTorch shapes
    dw1_w = rnd(keys[0], (channel, 1, K, 1)); dw1_b = rnd(keys[1], (channel,))
    pw1_w = rnd(keys[2], (inner, channel, 1, 1)); pw1_b = rnd(keys[3], (inner,))
    pw2_w = rnd(keys[4], (channel, inner, 1, 1)); pw2_b = rnd(keys[5], (channel,))
    dw2_w = rnd(keys[6], (channel, 1, K, 1)); dw2_b = rnd(keys[7], (channel,))

    def bn(ks, c):
        gamma = 1.0 + rnd(ks[0], (c,))
        beta = rnd(ks[1], (c,))
        mean = rnd(ks[2], (c,))
        var = jnp.abs(rnd(ks[3], (c,))) + 0.5
        return gamma, beta, mean, var

    bn1 = bn(keys[8:12], channel)
    bn2 = bn(keys[12:16], inner)
    bn3 = bn(keys[16:20], channel)
    bn4 = bn(keys[20:24], channel)

    def fold_depthwise(w, b, bnp):
        gamma, beta, mean, var = bnp
        scale = gamma / jnp.sqrt(var + EPS)          # (C,)
        w_kc = jnp.transpose(w[:, 0, :, 0])          # (C,K) -> (K,C)
        w_fold = w_kc * scale[None, :]
        b_fold = scale * (b - mean) + beta
        return w_fold, b_fold.reshape(1, -1)

    def fold_pointwise(w, b, bnp):
        gamma, beta, mean, var = bnp
        scale = gamma / jnp.sqrt(var + EPS)          # (Cout,)
        w2d = w[:, :, 0, 0]                          # (Cout, Cin)
        w_fold = jnp.transpose(w2d * scale[:, None]) # (Cin, Cout)
        b_fold = scale * (b - mean) + beta
        return w_fold, b_fold.reshape(1, -1)

    dw1w, dw1b = fold_depthwise(dw1_w, dw1_b, bn1)
    pw1w, pw1b = fold_pointwise(pw1_w, pw1_b, bn2)
    pw2w, pw2b = fold_pointwise(pw2_w, pw2_b, bn3)
    dw2w, dw2b = fold_depthwise(dw2_w, dw2_b, bn4)
    return dw1w, dw1b, pw1w, pw1b, pw2w, pw2b, dw2w, dw2b


# ---------------------------------------------------------------------------
# Pure-JAX reference (unfused f32 math, NTVC layout) for correctness check
# ---------------------------------------------------------------------------
def reference(x, params):
    dw1w, dw1b, pw1w, pw1b, pw2w, pw2b, dw2w, dw2b = params

    def dw(x, w, b):
        K = w.shape[0]
        pad = (K - 1) // 2
        T = x.shape[1]
        xp = jnp.pad(x, ((0, 0), (pad, pad), (0, 0), (0, 0)))
        acc = sum(xp[:, k:k + T] * w[k][None, None, None, :] for k in range(K))
        return acc + b[0][None, None, None, :]

    res = x
    y = jnp.maximum(dw(x, dw1w, dw1b), 0.0)
    y = jnp.einsum('ntvc,cd->ntvd', y, pw1w) + pw1b[0]
    y = jnp.maximum(jnp.einsum('ntvd,dc->ntvc', y, pw2w) + pw2b[0], 0.0)
    y = dw(y, dw2w, dw2b)
    return y + res


if __name__ == "__main__":
    # Small shapes: N=2, channel=16, T=16, V=16, temporal_window_size=5, reduct_ratio=4
    N, C, T, V = 2, 16, 16, 16
    K = 5
    reduct_ratio = 4

    key = jax.random.PRNGKey(0)
    kx, kp = jax.random.split(key)
    x_nchw = jax.random.normal(kx, (N, C, T, V), jnp.float32)   # PyTorch NCHW = (N, C, T, V)
    params = make_params(kp, C, K, reduct_ratio)

    x_ntvc = jnp.transpose(x_nchw, (0, 2, 3, 1))                # -> NTVC for kernel
    out = temporal_sg_layer(x_ntvc, params)
    out = jax.block_until_ready(out)

    ref = reference(x_ntvc, params)
    # Tolerance loosened slightly vs. pure-f32: the pointwise matmul operands are bf16.
    assert jnp.allclose(out, ref, atol=5e-3, rtol=5e-3), float(jnp.max(jnp.abs(out - ref)))
    print("KERNEL_OK")
</pallas_src>

<mosaic_0001>
module attributes {stable_mosaic.version = 11 : i64} {
  func.func @temporal_sg_kernel(%arg0: i32, %arg1: memref<1x16x256xf32, #tpu.memory_space<vmem>>, %arg2: memref<5x256xf32, #tpu.memory_space<vmem>>, %arg3: memref<1x256xf32, #tpu.memory_space<vmem>>, %arg4: memref<128x128xbf16, #tpu.memory_space<vmem>>, %arg5: memref<1x128xf32, #tpu.memory_space<vmem>>, %arg6: memref<5x256xf32, #tpu.memory_space<vmem>>, %arg7: memref<1x256xf32, #tpu.memory_space<vmem>>, %arg8: memref<1x16x256xf32, #tpu.memory_space<vmem>>, %arg9: memref<1x20x256xf32, #tpu.memory_space<vmem>>) attributes {dimension_semantics = [#tpu.dimension_semantics<parallel>], iteration_bounds = array<i64: 2>, scalar_prefetch = 0 : i64, scratch_operands = 1 : i64, tpu.core_type = #tpu.core_type<tc>, window_params = [{transform_indices = @transform_0, window_bounds = array<i64: 1, 16, 256>}, {pipeline_mode = #tpu.pipeline_mode<synchronous>, transform_indices = @transform_1, window_bounds = array<i64: 5, 256>}, {pipeline_mode = #tpu.pipeline_mode<synchronous>, transform_indices = @transform_2, window_bounds = array<i64: 1, 256>}, {pipeline_mode = #tpu.pipeline_mode<synchronous>, transform_indices = @transform_3, window_bounds = array<i64: 128, 128>}, {pipeline_mode = #tpu.pipeline_mode<synchronous>, transform_indices = @transform_4, window_bounds = array<i64: 1, 128>}, {pipeline_mode = #tpu.pipeline_mode<synchronous>, transform_indices = @transform_5, window_bounds = array<i64: 5, 256>}, {pipeline_mode = #tpu.pipeline_mode<synchronous>, transform_indices = @transform_6, window_bounds = array<i64: 1, 256>}, {transform_indices = @transform_7, window_bounds = array<i64: 1, 16, 256>}]} {
    %cst = arith.constant 0.000000e+00 : f32
    %0 = vector.broadcast %cst : f32 to vector<1x2x256xf32>
    %c0 = arith.constant 0 : index
    %c0_0 = arith.constant 0 : index
    %c0_1 = arith.constant 0 : index
    %1 = vector.load %arg9[%c0, %c0_0, %c0_1] : memref<1x20x256xf32, #tpu.memory_space<vmem>>, vector<1x2x256xf32>
    tpu.vector_store %arg9[%c0, %c0_0, %c0_1], %0 {strides = array<i32>} : memref<1x20x256xf32, #tpu.memory_space<vmem>>, vector<1x2x256xf32>,
    %c0_2 = arith.constant 0 : index
    %c18 = arith.constant 18 : index
    %c0_3 = arith.constant 0 : index
    %2 = vector.load %arg9[%c0_2, %c18, %c0_3] : memref<1x20x256xf32, #tpu.memory_space<vmem>>, vector<1x2x256xf32>
    tpu.vector_store %arg9[%c0_2, %c18, %c0_3], %0 {strides = array<i32>} : memref<1x20x256xf32, #tpu.memory_space<vmem>>, vector<1x2x256xf32>,
    %c0_4 = arith.constant 0 : index
    %c0_5 = arith.constant 0 : index
    %c0_6 = arith.constant 0 : index
    %3 = vector.load %arg1[%c0_4, %c0_5, %c0_6] : memref<1x16x256xf32, #tpu.memory_space<vmem>>, vector<1x16x256xf32>
    %c0_7 = arith.constant 0 : index
    %c2 = arith.constant 2 : index
    %c0_8 = arith.constant 0 : index
    %4 = vector.load %arg9[%c0_7, %c2, %c0_8] : memref<1x20x256xf32, #tpu.memory_space<vmem>>, vector<1x16x256xf32>
    tpu.vector_store %arg9[%c0_7, %c2, %c0_8], %3 {strides = array<i32>} : memref<1x20x256xf32, #tpu.memory_space<vmem>>, vector<1x16x256xf32>,
    %c0_9 = arith.constant 0 : index
    %c0_10 = arith.constant 0 : index
    %5 = vector.load %arg2[%c0_9, %c0_10] : memref<5x256xf32, #tpu.memory_space<vmem>>, vector<5x256xf32>
    %c0_11 = arith.constant 0 : index
    %c0_12 = arith.constant 0 : index
    %c0_13 = arith.constant 0 : index
    %6 = vector.load %arg9[%c0_11, %c0_12, %c0_13] : memref<1x20x256xf32, #tpu.memory_space<vmem>>, vector<1x16x256xf32>
    %7 = vector.extract_strided_slice %5 {offsets = [0, 0], sizes = [1, 256], strides = [1, 1]} : vector<5x256xf32> to vector<1x256xf32>
    %8 = vector.shape_cast %7 : vector<1x256xf32> to vector<256xf32>
    %9 = vector.shape_cast %8 : vector<256xf32> to vector<1x1x256xf32>
    %10 = vector.broadcast %9 : vector<1x1x256xf32> to vector<1x16x256xf32>
    %11 = arith.mulf %6, %10 : vector<1x16x256xf32>
    %c0_14 = arith.constant 0 : index
    %c1 = arith.constant 1 : index
    %c0_15 = arith.constant 0 : index
    %12 = vector.load %arg9[%c0_14, %c1, %c0_15] : memref<1x20x256xf32, #tpu.memory_space<vmem>>, vector<1x16x256xf32>
    %13 = vector.extract_strided_slice %5 {offsets = [1, 0], sizes = [1, 256], strides = [1, 1]} : vector<5x256xf32> to vector<1x256xf32>
    %14 = vector.shape_cast %13 : vector<1x256xf32> to vector<256xf32>
    %15 = vector.shape_cast %14 : vector<256xf32> to vector<1x1x256xf32>
    %16 = vector.broadcast %15 : vector<1x1x256xf32> to vector<1x16x256xf32>
    %17 = arith.mulf %12, %16 : vector<1x16x256xf32>
    %18 = arith.addf %11, %17 : vector<1x16x256xf32>
    %c0_16 = arith.constant 0 : index
    %c2_17 = arith.constant 2 : index
    %c0_18 = arith.constant 0 : index
    %19 = vector.load %arg9[%c0_16, %c2_17, %c0_18] : memref<1x20x256xf32, #tpu.memory_space<vmem>>, vector<1x16x256xf32>
    %20 = vector.extract_strided_slice %5 {offsets = [2, 0], sizes = [1, 256], strides = [1, 1]} : vector<5x256xf32> to vector<1x256xf32>
    %21 = vector.shape_cast %20 : vector<1x256xf32> to vector<256xf32>
    %22 = vector.shape_cast %21 : vector<256xf32> to vector<1x1x256xf32>
    %23 = vector.broadcast %22 : vector<1x1x256xf32> to vector<1x16x256xf32>
    %24 = arith.mulf %19, %23 : vector<1x16x256xf32>
    %25 = arith.addf %18, %24 : vector<1x16x256xf32>
    %c0_19 = arith.constant 0 : index
    %c3 = arith.constant 3 : index
    %c0_20 = arith.constant 0 : index
    %26 = vector.load %arg9[%c0_19, %c3, %c0_20] : memref<1x20x256xf32, #tpu.memory_space<vmem>>, vector<1x16x256xf32>
    %27 = vector.extract_strided_slice %5 {offsets = [3, 0], sizes = [1, 256], strides = [1, 1]} : vector<5x256xf32> to vector<1x256xf32>
    %28 = vector.shape_cast %27 : vector<1x256xf32> to vector<256xf32>
    %29 = vector.shape_cast %28 : vector<256xf32> to vector<1x1x256xf32>
    %30 = vector.broadcast %29 : vector<1x1x256xf32> to vector<1x16x256xf32>
    %31 = arith.mulf %26, %30 : vector<1x16x256xf32>
    %32 = arith.addf %25, %31 : vector<1x16x256xf32>
    %c0_21 = arith.constant 0 : index
    %c4 = arith.constant 4 : index
    %c0_22 = arith.constant 0 : index
    %33 = vector.load %arg9[%c0_21, %c4, %c0_22] : memref<1x20x256xf32, #tpu.memory_space<vmem>>, vector<1x16x256xf32>
    %34 = vector.extract_strided_slice %5 {offsets = [4, 0], sizes = [1, 256], strides = [1, 1]} : vector<5x256xf32> to vector<1x256xf32>
    %35 = vector.shape_cast %34 : vector<1x256xf32> to vector<256xf32>
    %36 = vector.shape_cast %35 : vector<256xf32> to vector<1x1x256xf32>
    %37 = vector.broadcast %36 : vector<1x1x256xf32> to vector<1x16x256xf32>
    %38 = arith.mulf %33, %37 : vector<1x16x256xf32>
    %39 = arith.addf %32, %38 : vector<1x16x256xf32>
    %c0_23 = arith.constant 0 : index
    %c0_24 = arith.constant 0 : index
    %40 = vector.load %arg3[%c0_23, %c0_24] : memref<1x256xf32, #tpu.memory_space<vmem>>, vector<1x256xf32>
    %41 = vector.shape_cast %40 : vector<1x256xf32> to vector<256xf32>
    %42 = vector.shape_cast %41 : vector<256xf32> to vector<1x1x256xf32>
    %43 = vector.broadcast %42 : vector<1x1x256xf32> to vector<1x16x256xf32>
    %44 = arith.addf %39, %43 : vector<1x16x256xf32>
    %cst_25 = arith.constant 0.000000e+00 : f32
    %45 = vector.broadcast %cst_25 : f32 to vector<1x16x256xf32>
    %46 = arith.maximumf %44, %45 : vector<1x16x256xf32>
    %c0_26 = arith.constant 0 : index
    %c0_27 = arith.constant 0 : index
    %47 = vector.load %arg4[%c0_26, %c0_27] : memref<128x128xbf16, #tpu.memory_space<vmem>>, vector<128x128xbf16>
    %c0_28 = arith.constant 0 : index
    %c0_29 = arith.constant 0 : index
    %48 = vector.load %arg5[%c0_28, %c0_29] : memref<1x128xf32, #tpu.memory_space<vmem>>, vector<1x128xf32>
    %49 = vector.shape_cast %48 : vector<1x128xf32> to vector<128xf32>
    %50 = vector.extract_strided_slice %46 {offsets = [0, 0, 0], sizes = [1, 16, 128], strides = [1, 1, 1]} : vector<1x16x256xf32> to vector<1x16x128xf32>
    %51 = vector.shape_cast %50 : vector<1x16x128xf32> to vector<16x128xf32>
    %52 = arith.truncf %51 : vector<16x128xf32> to vector<16x128xbf16>
    %cst_30 = arith.constant dense<0.000000e+00> : vector<16x128xf32>
    %53 = tpu.matmul %52, %47, %cst_30 {dimension_numbers = #tpu.dot_dimension_numbers<[1], [0], [0], [1], [0, 0, 1, 1], [], []>} : vector<16x128xbf16>, vector<128x128xbf16>, vector<16x128xf32> -> vector<16x128xf32>
    %54 = vector.shape_cast %49 : vector<128xf32> to vector<1x128xf32>
    %55 = vector.broadcast %54 : vector<1x128xf32> to vector<16x128xf32>
    %56 = arith.addf %53, %55 : vector<16x128xf32>
    %cst_31 = arith.constant 0.000000e+00 : f32
    %57 = vector.broadcast %cst_31 : f32 to vector<16x128xf32>
    %58 = arith.maximumf %56, %57 : vector<16x128xf32>
    %59 = vector.shape_cast %58 : vector<16x128xf32> to vector<1x16x128xf32>
    %c0_32 = arith.constant 0 : index
    %c2_33 = arith.constant 2 : index
    %c0_34 = arith.constant 0 : index
    %60 = vector.load %arg9[%c0_32, %c2_33, %c0_34] : memref<1x20x256xf32, #tpu.memory_space<vmem>>, vector<1x16x128xf32>
    tpu.vector_store %arg9[%c0_32, %c2_33, %c0_34], %59 {strides = array<i32>} : memref<1x20x256xf32, #tpu.memory_space<vmem>>, vector<1x16x128xf32>,
    %61 = vector.extract_strided_slice %46 {offsets = [0, 0, 128], sizes = [1, 16, 128], strides = [1, 1, 1]} : vector<1x16x256xf32> to vector<1x16x128xf32>
    %62 = vector.shape_cast %61 : vector<1x16x128xf32> to vector<16x128xf32>
    %63 = arith.truncf %62 : vector<16x128xf32> to vector<16x128xbf16>
    %cst_35 = arith.constant dense<0.000000e+00> : vector<16x128xf32>
    %64 = tpu.matmul %63, %47, %cst_35 {dimension_numbers = #tpu.dot_dimension_numbers<[1], [0], [0], [1], [0, 0, 1, 1], [], []>} : vector<16x128xbf16>, vector<128x128xbf16>, vector<16x128xf32> -> vector<16x128xf32>
    %65 = vector.shape_cast %49 : vector<128xf32> to vector<1x128xf32>
    %66 = vector.broadcast %65 : vector<1x128xf32> to vector<16x128xf32>
    %67 = arith.addf %64, %66 : vector<16x128xf32>
    %cst_36 = arith.constant 0.000000e+00 : f32
    %68 = vector.broadcast %cst_36 : f32 to vector<16x128xf32>
    %69 = arith.maximumf %67, %68 : vector<16x128xf32>
    %70 = vector.shape_cast %69 : vector<16x128xf32> to vector<1x16x128xf32>
    %c0_37 = arith.constant 0 : index
    %c2_38 = arith.constant 2 : index
    %c128 = arith.constant 128 : index
    %71 = vector.load %arg9[%c0_37, %c2_38, %c128] : memref<1x20x256xf32, #tpu.memory_space<vmem>>, vector<1x16x128xf32>
    tpu.vector_store %arg9[%c0_37, %c2_38, %c128], %70 {strides = array<i32>} : memref<1x20x256xf32, #tpu.memory_space<vmem>>, vector<1x16x128xf32>,
    %c0_39 = arith.constant 0 : index
    %c0_40 = arith.constant 0 : index
    %72 = vector.load %arg6[%c0_39, %c0_40] : memref<5x256xf32, #tpu.memory_space<vmem>>, vector<5x256xf32>
    %c0_41 = arith.constant 0 : index
    %c0_42 = arith.constant 0 : index
    %c0_43 = arith.constant 0 : index
    %73 = vector.load %arg9[%c0_41, %c0_42, %c0_43] : memref<1x20x256xf32, #tpu.memory_space<vmem>>, vector<1x16x256xf32>
    %74 = vector.extract_strided_slice %72 {offsets = [0, 0], sizes = [1, 256], strides = [1, 1]} : vector<5x256xf32> to vector<1x256xf32>
    %75 = vector.shape_cast %74 : vector<1x256xf32> to vector<256xf32>
    %76 = vector.shape_cast %75 : vector<256xf32> to vector<1x1x256xf32>
    %77 = vector.broadcast %76 : vector<1x1x256xf32> to vector<1x16x256xf32>
    %78 = arith.mulf %73, %77 : vector<1x16x256xf32>
    %c0_44 = arith.constant 0 : index
    %c1_45 = arith.constant 1 : index
    %c0_46 = arith.constant 0 : index
    %79 = vector.load %arg9[%c0_44, %c1_45, %c0_46] : memref<1x20x256xf32, #tpu.memory_space<vmem>>, vector<1x16x256xf32>
    %80 = vector.extract_strided_slice %72 {offsets = [1, 0], sizes = [1, 256], strides = [1, 1]} : vector<5x256xf32> to vector<1x256xf32>
    %81 = vector.shape_cast %80 : vector<1x256xf32> to vector<256xf32>
    %82 = vector.shape_cast %81 : vector<256xf32> to vector<1x1x256xf32>
    %83 = vector.broadcast %82 : vector<1x1x256xf32> to vector<1x16x256xf32>
    %84 = arith.mulf %79, %83 : vector<1x16x256xf32>
    %85 = arith.addf %78, %84 : vector<1x16x256xf32>
    %c0_47 = arith.constant 0 : index
    %c2_48 = arith.constant 2 : index
    %c0_49 = arith.constant 0 : index
    %86 = vector.load %arg9[%c0_47, %c2_48, %c0_49] : memref<1x20x256xf32, #tpu.memory_space<vmem>>, vector<1x16x256xf32>
    %87 = vector.extract_strided_slice %72 {offsets = [2, 0], sizes = [1, 256], strides = [1, 1]} : vector<5x256xf32> to vector<1x256xf32>
    %88 = vector.shape_cast %87 : vector<1x256xf32> to vector<256xf32>
    %89 = vector.shape_cast %88 : vector<256xf32> to vector<1x1x256xf32>
    %90 = vector.broadcast %89 : vector<1x1x256xf32> to vector<1x16x256xf32>
    %91 = arith.mulf %86, %90 : vector<1x16x256xf32>
    %92 = arith.addf %85, %91 : vector<1x16x256xf32>
    %c0_50 = arith.constant 0 : index
    %c3_51 = arith.constant 3 : index
    %c0_52 = arith.constant 0 : index
    %93 = vector.load %arg9[%c0_50, %c3_51, %c0_52] : memref<1x20x256xf32, #tpu.memory_space<vmem>>, vector<1x16x256xf32>
    %94 = vector.extract_strided_slice %72 {offsets = [3, 0], sizes = [1, 256], strides = [1, 1]} : vector<5x256xf32> to vector<1x256xf32>
    %95 = vector.shape_cast %94 : vector<1x256xf32> to vector<256xf32>
    %96 = vector.shape_cast %95 : vector<256xf32> to vector<1x1x256xf32>
    %97 = vector.broadcast %96 : vector<1x1x256xf32> to vector<1x16x256xf32>
    %98 = arith.mulf %93, %97 : vector<1x16x256xf32>
    %99 = arith.addf %92, %98 : vector<1x16x256xf32>
    %c0_53 = arith.constant 0 : index
    %c4_54 = arith.constant 4 : index
    %c0_55 = arith.constant 0 : index
    %100 = vector.load %arg9[%c0_53, %c4_54, %c0_55] : memref<1x20x256xf32, #tpu.memory_space<vmem>>, vector<1x16x256xf32>
    %101 = vector.extract_strided_slice %72 {offsets = [4, 0], sizes = [1, 256], strides = [1, 1]} : vector<5x256xf32> to vector<1x256xf32>
    %102 = vector.shape_cast %101 : vector<1x256xf32> to vector<256xf32>
    %103 = vector.shape_cast %102 : vector<256xf32> to vector<1x1x256xf32>
    %104 = vector.broadcast %103 : vector<1x1x256xf32> to vector<1x16x256xf32>
    %105 = arith.mulf %100, %104 : vector<1x16x256xf32>
    %106 = arith.addf %99, %105 : vector<1x16x256xf32>
    %c0_56 = arith.constant 0 : index
    %c0_57 = arith.constant 0 : index
    %107 = vector.load %arg7[%c0_56, %c0_57] : memref<1x256xf32, #tpu.memory_space<vmem>>, vector<1x256xf32>
    %108 = vector.shape_cast %107 : vector<1x256xf32> to vector<256xf32>
    %109 = vector.shape_cast %108 : vector<256xf32> to vector<1x1x256xf32>
    %110 = vector.broadcast %109 : vector<1x1x256xf32> to vector<1x16x256xf32>
    %111 = arith.addf %106, %110 : vector<1x16x256xf32>
    %c0_58 = arith.constant 0 : index
    %c0_59 = arith.constant 0 : index
    %c0_60 = arith.constant 0 : index
    %112 = vector.load %arg1[%c0_58, %c0_59, %c0_60] : memref<1x16x256xf32, #tpu.memory_space<vmem>>, vector<1x16x256xf32>
    %113 = arith.addf %111, %112 : vector<1x16x256xf32>
    %c0_61 = arith.constant 0 : index
    %c0_62 = arith.constant 0 : index
    %c0_63 = arith.constant 0 : index
    %114 = vector.load %arg8[%c0_61, %c0_62, %c0_63] : memref<1x16x256xf32, #tpu.memory_space<vmem>>, vector<1x16x256xf32>
    tpu.vector_store %arg8[%c0_61, %c0_62, %c0_63], %113 {strides = array<i32>} : memref<1x16x256xf32, #tpu.memory_space<vmem>>, vector<1x16x256xf32>,
    return
  }
  func.func @transform_0(%arg0: i32) -> (i32, i32, i32) {
    %c0_i32 = arith.constant 0 : i32
    %c0_i32_0 = arith.constant 0 : i32
    %c0_i32_1 = arith.constant 0 : i32
    return %arg0, %c0_i32, %c0_i32_0 : i32, i32, i32
  }
  func.func @transform_1(%arg0: i32) -> (i32, i32) {
    %c0_i32 = arith.constant 0 : i32
    %c0_i32_0 = arith.constant 0 : i32
    %c0_i32_1 = arith.constant 0 : i32
    return %c0_i32, %c0_i32_0 : i32, i32
  }
  func.func @transform_2(%arg0: i32) -> (i32, i32) {
    %c0_i32 = arith.constant 0 : i32
    %c0_i32_0 = arith.constant 0 : i32
    %c0_i32_1 = arith.constant 0 : i32
    return %c0_i32, %c0_i32_0 : i32, i32
  }
  func.func @transform_3(%arg0: i32) -> (i32, i32) {
    %c0_i32 = arith.constant 0 : i32
    %c0_i32_0 = arith.constant 0 : i32
    %c0_i32_1 = arith.constant 0 : i32
    return %c0_i32, %c0_i32_0 : i32, i32
  }
  func.func @transform_4(%arg0: i32) -> (i32, i32) {
    %c0_i32 = arith.constant 0 : i32
    %c0_i32_0 = arith.constant 0 : i32
    %c0_i32_1 = arith.constant 0 : i32
    return %c0_i32, %c0_i32_0 : i32, i32
  }
  func.func @transform_5(%arg0: i32) -> (i32, i32) {
    %c0_i32 = arith.constant 0 : i32
    %c0_i32_0 = arith.constant 0 : i32
    %c0_i32_1 = arith.constant 0 : i32
    return %c0_i32, %c0_i32_0 : i32, i32
  }
  func.func @transform_6(%arg0: i32) -> (i32, i32) {
    %c0_i32 = arith.constant 0 : i32
    %c0_i32_0 = arith.constant 0 : i32
    %c0_i32_1 = arith.constant 0 : i32
    return %c0_i32, %c0_i32_0 : i32, i32
  }
  func.func @transform_7(%arg0: i32) -> (i32, i32, i32) {
    %c0_i32 = arith.constant 0 : i32
    %c0_i32_0 = arith.constant 0 : i32
    %c0_i32_1 = arith.constant 0 : i32
    return %arg0, %c0_i32, %c0_i32_0 : i32, i32, i32
  }
}

</mosaic_0001>

<bundles_post_ra>
// kernel: tpu_custom_call.1
= control target key start
LH: loop header
LB: loop body
LE: loop exit
PB: predicated region body
PF: predicated region fallthrough
CT: control target
= control target key end

     0   :  { %12 = vsyncpa [#allocation4], 0  ;;  %s2000_s0 = inlined_call_operand.hbm [shape: f32[2,16,256], index: 0, kind: input, shape index: {}]   ;;  %s2001_s1 = inlined_call_operand.hbm [shape: f32[5,256], index: 1, kind: input, shape index: {}]   ;;  %s2002_s2 = inlined_call_operand.vmem [shape: f32[1,256], index: 2, kind: input, shape index: {}]   ;;  %s2003_s3 = inlined_call_operand.hbm [shape: bf16[128,128], index: 3, kind: input, shape index: {}]   ;;  %s2004_s4 = inlined_call_operand.hbm [shape: f32[1,128], index: 4, kind: input, shape index: {}]   ;;  %s2005_s5 = inlined_call_operand.vmem [shape: f32[5,256], index: 5, kind: input, shape index: {}]   ;;  %s2006_s6 = inlined_call_operand.vmem [shape: f32[1,256], index: 6, kind: input, shape index: {}]   ;;  %s2007_s7 = inlined_call_operand.hbm [shape: f32[2,16,256], index: 7, kind: output, shape index: {}]  }
   0x1   :  { %14 = vsyncpa [#allocation4 + $0x1], 0 }
   0x2   :  { %15 = vsyncpa [#allocation7], 0 }
   0x3   :  { %16 = vsyncpa [#allocation10], 0 }
   0x4   :  { %17 = vsyncpa [#allocation5], 0 }
   0x5   :  { %19 = vsyncpa [#allocation5 + $0x1], 0  ;;  %s1515_s24 = smov 0   ;;  %s1517_s25 = smov 0  }
   0x6   :  { %s1519_s26 = smov 0   ;;  %s1521_s27 = smov 0  }
   0x7 LB: > { %s1536_s28 = sadd.s32 4294967295, %s1460_s27   ;;  %s1090_s29 = sadd.s32 4294967294, %s1460_s27   ;;  %s1460_s27 = sphi %s1521_s27, %s2030_s27   ;;  %s1456_s26 = sphi %s1519_s26, %s2029_s26   ;;  %s1452_s25 = sphi %s1517_s25, %s2028_s25   ;;  %s1448_s24 = sphi %s1515_s24, %s2027_s24  }
   0x8   : > { %p45_p0 = scmp.ne.s32.totalorder %s1452_s25, %s1448_s24  ;;  %p2008_p1 = scmp.eq.s32.totalorder %s1536_s28, 0 }
   0x9   : > { %p201_p3 = scmp.eq.s32.totalorder %s1090_s29, 1  ;;  %p1091_p5 = scmp.ge.s32.totalorder %s1460_s27, 1 }
   0xa   : > { %p1545_p4 = por %p2008_p1, %p45_p0  ;;  %p208_p7 = scmp.lt.s32.totalorder %s1460_s27, 3 }
   0xb   : > { %p1550_p6 = por %p201_p3, %p45_p0  ;;  %s1462_s10 = smov [#allocation6]  }
   0xc   : > { %s2011_s30 = scalar_select %p1545_p4, 1, 0 }
   0xd   : > { %s2012_s8 = scalar_select %p1550_p6, 1, 0 }
   0xe   : > { %p1555_p8 = pnand %p1091_p5, %p208_p7  ;;  %s221_s11 = sshll.u32 %s1462_s10, 4  ;;  %s222_s11 = int_to_ptr.vmem [resolvable:$true] %s221_s11 }
   0xf   : > { %s1463_s12 = smov [#allocation8]   ;;  %s1464_s15 = smov [#allocation9]  }
  0x10   : > { %s2013_s9 = scalar_select %p1555_p8, 1, 0 }
  0x11   : > { %p1195_p10 = pneg %p1555_p8  ;;  %s234_s13 = sshll.u32 %s1463_s12, 4  ;;  %s1568_s13 = int_to_ptr.vmem [resolvable:$true] %s234_s13 }
  0x12   : > { %s1570_s16 = sshll.u32 %s1464_s15, 4  ;;  %s1272_s19 = scalar_lea.hbm %s2001_s1, 256  ;;  %s249_s16 = int_to_ptr.vmem [resolvable:$true] %s1570_s16 }
  0x13   : > { %p1564_p11 = pnand %p1195_p10, %p2008_p1  ;;  %p1273_p12 = scmp.ne.s32.totalorder %s2001_s1, %s1272_s19 }
  0x14   : > { %p1279_p5 = scmp.lt.u32.totalorder %s1272_s19, %s2001_s1 }
  0x15   : > { %p1580_p13 = pneg %p1564_p11 }
  0x17   : > { %p1275_p0 = pnand %p1580_p13, %p1273_p12 }
  0x19   : > { %p1276_p3 = pneg %p1275_p0 }
  0x1b   : > { %p1281_p7 = pnand %p1279_p5, %p1276_p3 }
  0x1d   : > { %1284 = shalt.err (!%p1281_p7)
}
  0x1e   : > { %s1285_s10 = scalar_lea.vmem %s222_s11, 256  ;;  %p1293_p2 = scmp.lt.s32.totalorder %s222_s11, %s222_s11 }
  0x1f   : > { %p1286_p10 = scmp.ne.s32.totalorder %s222_s11, %s1285_s10  ;;  %p1294_p6 = scmp.lt.s32.totalorder %s1285_s10, %s1285_s10 }
  0x21   : > { %p1288_p9 = pnand %p1286_p10, %p1580_p13  ;;  %p1295_p4 = por %p1294_p6, %p1293_p2 }
  0x23   : > { %p1289_p1 = pneg %p1288_p9 }
  0x25   : > { %p1296_p8 = pnand %p1295_p4, %p1289_p1 }
  0x27   : > { %1299 = shalt.err (!%p1296_p8)
}
  0x28   : > { %1198 = dma.hbm_to_vmem [thread:$0]  (!%p1564_p11), %s2001_s1, 256, %s222_s11, [#allocation7]  }
  0x29   : > { %s1300_s19 = scalar_lea.hbm %s2003_s3, 1024 }
  0x2a   : > { %p1301_p9 = scmp.ne.s32.totalorder %s2003_s3, %s1300_s19  ;;  %p1307_p1 = scmp.lt.u32.totalorder %s1300_s19, %s2003_s3 }
  0x2c   : > { %p1303_p12 = pnand %p1301_p9, %p1580_p13 }
  0x2e   : > { %p1304_p2 = pneg %p1303_p12 }
  0x30   : > { %p1309_p4 = pnand %p1307_p1, %p1304_p2 }
  0x32   : > { %1312 = shalt.err (!%p1309_p4)
}
  0x33   : > { %s1313_s11 = scalar_lea.vmem %s1568_s13, 1024  ;;  %p1321_p3 = scmp.lt.s32.totalorder %s1568_s13, %s1568_s13 }
  0x34   : > { %p1314_p6 = scmp.ne.s32.totalorder %s1568_s13, %s1313_s11  ;;  %p1322_p5 = scmp.lt.s32.totalorder %s1313_s11, %s1313_s11 }
  0x36   : > { %p1316_p8 = pnand %p1314_p6, %p1580_p13  ;;  %p1323_p7 = por %p1322_p5, %p1321_p3 }
  0x38   : > { %p1317_p0 = pneg %p1316_p8 }
  0x3a   : > { %p1324_p10 = pnand %p1323_p7, %p1317_p0 }
  0x3c   : > { %1327 = shalt.err (!%p1324_p10)
}
  0x3d   : > { %s1465_s10 = smov 64   ;;  %s1466_s12 = smov 4  }
  0x3e   : > { %1201 = dma.hbm_to_vmem [thread:$0]  (!%p1564_p11), %s2003_s3, 1024, %s1568_s13, [#allocation7], %s1465_s10, %s1465_s10, %s1466_s12  }
  0x3f   : > { %s1328_s20 = scalar_lea.hbm %s2004_s4, 16 }
  0x40   : > { %p1329_p9 = scmp.ne.s32.totalorder %s2004_s4, %s1328_s20  ;;  %p1335_p1 = scmp.lt.u32.totalorder %s1328_s20, %s2004_s4 }
  0x42   : > { %p1331_p12 = pnand %p1329_p9, %p1580_p13 }
  0x44   : > { %p1332_p2 = pneg %p1331_p12 }
  0x46   : > { %p1337_p4 = pnand %p1335_p1, %p1332_p2 }
  0x48   : > { %1340 = shalt.err (!%p1337_p4)
}
  0x49   : > { %s1341_s15 = scalar_lea.vmem %s249_s16, 16  ;;  %s1348_s13 = scalar_lea.vmem %s249_s16, 32 }
  0x4a   : > { %p1342_p6 = scmp.ne.s32.totalorder %s249_s16, %s1341_s15  ;;  %p1349_p3 = scmp.lt.s32.totalorder %s249_s16, %s249_s16 }
  0x4b   : > { %p1350_p5 = scmp.lt.s32.totalorder %s1348_s13, %s1341_s15 }
  0x4c   : > { %p1344_p8 = pnand %p1342_p6, %p1580_p13 }
  0x4d   : > { %p1351_p7 = por %p1350_p5, %p1349_p3 }
  0x4e   : > { %p1345_p0 = pneg %p1344_p8 }
  0x50   : > { %p1352_p10 = pnand %p1351_p7, %p1345_p0 }
  0x52   : > { %1355 = shalt.err (!%p1352_p10)
}
  0x53   : > { %1204 = dma.hbm_to_vmem [thread:$0]  (!%p1564_p11), %s2004_s4, 16, %s249_s16, [#allocation10]  }
  0x54   : > { %s1639_s22 = sadd.s32 1, %s1460_s27   ;;  %s32_s14 = sadd.s32 1, %s1456_s26 }
  0x55   : > { %s29_s17 = ssub.s32 %s1460_s27, %s1639_s22  ;;  %p39_p9 = scmp.ne.s32.totalorder %s1456_s26, %s1452_s25 }
  0x56   : > { %p30_p13 = scmp.eq.s32.totalorder %s29_s17, 0  ;;  %p40_p12 = scmp.eq.s32.totalorder %s1460_s27, 0 }
  0x57   : > { %p1216_p2 = scmp.lt.s32.totalorder %s1460_s27, 2  ;;  %p2016_p4 = scmp.eq.s32.totalorder %s1536_s28, 1 }
  0x58   : > { %s1649_s18 = scalar_select %p30_p13, %s1456_s26, %s32_s14  }
  0x59   : > { %p41_p1 = por %p40_p12, %p39_p9  ;;  %p1653_p6 = por %p2016_p4, %p39_p9 }
  0x5a   : > { %s265_s20 = sand.u32 1, %s1456_s26   ;;  %s1119_s21 = sshll.u32 %s1460_s27, 9 }
  0x5b   : > { %s1096_s16 = sshll.u32 %s265_s20, 5  ;;  %s1662_s11 = scalar_lea.hbm %s2000_s0, %s1119_s21 }
  0x5c   : > { %s269_s15 = scalar_lea.vmem [#allocation3], %s1096_s16  ;;  %p1664_p11 = pnand %p1216_p2, %p41_p1 }
  0x5d   : > { %s276_s13 = sshll.u32 %s269_s15, 4  ;;  %s1670_s12 = scalar_lea.sflag [#allocation4], %s265_s20  ;;  %s1668_s13 = int_to_ptr.vmem [resolvable:$true] %s276_s13 }
  0x5e   : > { %s1356_s17 = scalar_lea.hbm %s1662_s11, 512  ;;  %p1358_p0 = pneg %p1664_p11 }
  0x5f   : > { %p1357_p8 = scmp.ne.s32.totalorder %s1662_s11, %s1356_s17  ;;  %s1361_s16 = scalar_lea.hbm %s2000_s0, 1024 }
  0x60   : > { %p1362_p7 = scmp.lt.u32.totalorder %s1662_s11, %s2000_s0  ;;  %p1363_p10 = scmp.lt.u32.totalorder %s1361_s16, %s1356_s17 }
  0x61   : > { %p1359_p3 = pnand %p1358_p0, %p1357_p8  ;;  %p1365_p9 = scmp.lt.u32.totalorder %s1356_s17, %s1662_s11 }
  0x62   : > { %p1364_p13 = por %p1363_p10, %p1362_p7 }
  0x63   : > { %p1360_p5 = pneg %p1359_p3 }
  0x64   : > { %p1366_p12 = por %p1365_p9, %p1364_p13 }
  0x66   : > { %p1367_p2 = pnand %p1366_p12, %p1360_p5 }
  0x68   : > { %1370 = shalt.err (!%p1367_p2)
}
  0x69   : > { %s1371_s20 = scalar_lea.vmem %s1668_s13, 512  ;;  %s1467_s15 = smov [#allocation3]  }
  0x6a   : > { %p1372_p1 = scmp.ne.s32.totalorder %s1668_s13, %s1371_s20  ;;  %s1376_s14 = sshll.u32 %s1467_s15, 4  ;;  %s1377_s14 = int_to_ptr.vmem [resolvable:$false] %s1376_s14 }
  0x6b   : > { %s1378_s21 = scalar_lea.vmem %s1377_s14, 1024  ;;  %p1379_p3 = scmp.lt.s32.totalorder %s1668_s13, %s1377_s14 }
  0x6c   : > { %p1374_p4 = pnand %p1372_p1, %p1358_p0  ;;  %p1380_p7 = scmp.lt.s32.totalorder %s1378_s21, %s1371_s20 }
  0x6e   : > { %p1375_p8 = pneg %p1374_p4  ;;  %p1381_p10 = por %p1380_p7, %p1379_p3 }
  0x70   : > { %p1382_p13 = pnand %p1381_p10, %p1375_p8 }
  0x72   : > { %1385 = shalt.err (!%p1382_p13)
}
  0x73   : > { %s1468_s17 = smov 256   ;;  %s1469_s16 = smov 16  }
  0x74   : > { %1208 = dma.hbm_to_vmem [thread:$0]  (!%p1664_p11), %s1662_s11, 512, %s1668_s13, %s1670_s12, %s1468_s17, %s1468_s17, %s1469_s16  }
  0x75   : > { %p2019_p0 = scmp.ne.s32.totalorder %s2013_s9, 0 }
  0x76   : > { %s1701_s23 = sand.u32 (!%p2019_p0), 1, %s1452_s25   ;;  %p2020_p5 = scmp.ne.s32.totalorder (!%p2019_p0), %s2011_s30, 0 }
  0x77   : > { %288 = sbr.rel (%p2019_p0) target bundleno = 440 (0x1b8), region = 48  ;;  %s1100_s29 = sshll.u32 (!%p2019_p0), %s1701_s23, 5 }
  0x78   : > { %s291_s20 = scalar_lea.sflag (!%p2019_p0), [#allocation4], %s1701_s23  ;;  %s1707_s15 = scalar_lea.vmem (!%p2019_p0), [#allocation3], %s1100_s29 }
  0x7e   : > { %1431 = dma.done.wait (%p2020_p5), %s291_s20, 512  }
  0x7f   : > { %1433 = vsyncadd (%p2020_p5), %s291_s20, 4294966784  ;;  %p2021_p11 = scmp.eq.s32.totalorder %s1536_s28, 0 }
  0x81   : > { %1435 = dma.done.wait (%p2021_p11), [#allocation7], 1280   ;;  %p2022_p9 = pmov %p2021_p11 }
  0x83   : > { %1437 = vsyncadd (%p2022_p9), [#allocation7], 4294966016  ;;  %p2023_p12 = pmov %p2022_p9 }
  0x84   : > { %p2024_p2 = pmov %p2022_p9 }
  0x85   : > { %1439 = dma.done.wait (%p2023_p12), [#allocation10], 16  }
  0x86   : > { %1441 = vsyncadd (%p2024_p2), [#allocation10], 4294967280  ;;  %v1470_v0 = vmov 0.0   ;;  %vm1471_vm0 = vmmov 0   ;;  %v375_v1 = vlaneseq  ;;  %v1264_v2 = vld [vmem:[#allocation8] sm:$0xff]   ;;  %v1265_v4 = vld [vmem:[#allocation8 + $0x8] sm:$0xff]  }
  0x87   : > { %1139 = vmatprep.subr.bf16.mxu0 %v1470_v0  ;;  %338 = vst [vmem:[#allocation2] sm:$0x3] %v1470_v0  ;;  %339 = vst [vmem:[#allocation2 + $0x8] sm:$0x3] %v1470_v0  ;;  %1159 = vmatprep.subr.bf16.mxu1 %v1470_v0  ;;  %v1266_v8 = vld [vmem:[#allocation8 + $0x10] sm:$0xff]   ;;  %v1745_v11 = vld [vmem:[%s1707_s15 + $0x10] sm:$0xff] }
  0x88   : > { %340 = vst [vmem:[#allocation2 + $0x20] sm:$0xc] %v1470_v0  ;;  %341 = vst [vmem:[#allocation2 + $0x28] sm:$0xc] %v1470_v0  ;;  %1155 = vmatprep.mubr.msk.bf16.mxu0 %vm1471_vm0, %v1470_v0  ;;  %1175 = vmatprep.mubr.msk.bf16.mxu1 %vm1471_vm0, %v1470_v0  ;;  %v376_v3 = vshrl.u32 %v375_v1, 7  ;;  %v1742_v10 = vld [vmem:[%s1707_s15] sm:$0xff] }
  0x89   : > { %1140 = vmatpush3.bf16.msra.mxu0 %v1264_v2  ;;  %1160 = vmatpush3.bf16.msra.mxu1 %v1264_v2  ;;  %vm350_vm1 = vcmask 1041408   ;;  %v369_v12 = vld [vmem:[#allocation6] sm:$0x1f]  ;;  %v351_v14 = vrot.slane %v1742_v10, 6  ;;  %v353_v15 = vrot.slane %v1745_v11, 6  ;;  %v1267_v17 = vld [vmem:[#allocation8 + $0x18] sm:$0xff]  }
  0x8a   : > { %1141 = vmatprep.subr.bf16.mxu0 %v1470_v0  ;;  %1161 = vmatprep.subr.bf16.mxu1 %v1470_v0  ;;  %v1731_v5 = vsub.s32 1, %v376_v3  ;;  %v1733_v6 = vsub.s32 2, %v376_v3  ;;  %v1735_v7 = vsub.s32 3, %v376_v3  ;;  %v1737_v9 = vsub.s32 4, %v376_v3  ;;  %v1760_v21 = vld [vmem:[%s1707_s15 + $0x8] sm:$0xff]  ;;  %v1780_v29 = vld [vmem:[%s1707_s15 + $0x18] sm:$0xff] }
  0x8b   : > { %v1747_v13 = vsub.s32 0, %v376_v3  ;;  %v354_v22 = vsel %vm350_vm1, %v351_v14, %v353_v15  ;;  %363 = vst [vmem:[#allocation2] sm:$0xfc] %v351_v14  ;;  %367 = vst [vmem:[#allocation2 + $0x20] sm:$0x3] %v353_v15  ;;  %v352_v23 = vrot.slane %v1760_v21, 6 }
  0x8c   : > { %v394_v16 = vrot.slane %v369_v12, %v1731_v5  ;;  %v437_v18 = vrot.slane %v369_v12, %v1733_v6  ;;  %v1754_v19 = vrot.slane %v369_v12, %v1735_v7  ;;  %v1757_v20 = vrot.slane %v369_v12, %v1737_v9  ;;  %v1772_v26 = vld [vmem:[%s2002_s2] sm:$0x3]  ;;  %v370_v32 = vld [vmem:[#allocation6 + $0x8] sm:$0x1f]  ;;  %v1269_v38 = vld [vmem:[#allocation8 + $0x28] sm:$0xff]   ;;  %s336_s17 = scalar_lea.vmem [#allocation11], %s1100_s29 }
  0x8d   : > { %1142 = vmatpush3.bf16.msra.mxu0 %v1265_v4  ;;  %1162 = vmatpush3.bf16.msra.mxu1 %v1265_v4  ;;  %v378_v24 = vrot.slane %v369_v12, %v1747_v13  ;;  %364 = vst [vmem:[#allocation2 + $0x8] sm:$0xfc] %v352_v23  ;;  %v1268_v30 = vld [vmem:[#allocation8 + $0x20] sm:$0xff]   ;;  %vm411_vm2 = vcmask 1046528   ;;  %vm454_vm3 = vcmask 1045504   ;;  %vm497_vm4 = vcmask 1044480  }
  0x8e   : > { %1143 = vmatprep.subr.bf16.mxu0 %v1470_v0  ;;  %1163 = vmatprep.subr.bf16.mxu1 %v1470_v0  ;;  %v1767_v25 = vmul.f32 %v394_v16, %v354_v22  ;;  %v1774_v27 = vmul.f32 %v437_v18, %v354_v22  ;;  %v1777_v28 = vmul.f32 %v1754_v19, %v354_v22  ;;  %vm540_vm5 = vcmask 1043456   ;;  %v1270_v4 = vld [vmem:[#allocation8 + $0x30] sm:$0xff]   ;;  %s1120_s16 = sshll.u32 %s1536_s28, 9  ;;  %s988_s20 = sshll.u32 %s336_s17, 4  ;;  %s1955_s20 = int_to_ptr.vmem [resolvable:$true] %s988_s20 }
  0x8f   : > { %v1783_v31 = vmul.f32 %v1757_v20, %v354_v22  ;;  %v1789_v33 = vrot.slane %v1772_v26, %v1747_v13  ;;  %v385_v34 = vmul.f32 %v378_v24, %v354_v22  ;;  %v355_v36 = vrot.slane %v1780_v29, 6  ;;  %s1953_s9 = scalar_lea.hbm %s2007_s7, %s1120_s16  ;;  %s975_s28 = scalar_lea.sflag [#allocation5], %s1701_s23 }
  0x90   : > { %v413_v35 = vrot.slane %v1767_v25, 1  ;;  %v1794_v37 = vrot.slane %v370_v32, %v1747_v13  ;;  %v456_v39 = vrot.slane %v1774_v27, 2  ;;  %v499_v40 = vrot.slane %v1777_v28, 3  ;;  %s1386_s29 = scalar_lea.vmem %s1955_s20, 512  ;;  %s1472_s11 = smov [#allocation11]  }
  0x91   : > { %1144 = vmatpush3.bf16.msra.mxu0 %v1266_v8  ;;  %1164 = vmatpush3.bf16.msra.mxu1 %v1266_v8  ;;  %v1799_v41 = vrot.slane %v370_v32, %v1731_v5  ;;  %v1802_v42 = vrot.slane %v370_v32, %v1733_v6  ;;  %v542_v46 = vrot.slane %v1783_v31, 4  ;;  %v1806_v47 = vsel %vm350_vm1, %v352_v23, %v355_v36  ;;  %p1387_p1 = scmp.ne.s32.totalorder %s1955_s20, %s1386_s29  ;;  %s1390_s13 = sshll.u32 %s1472_s11, 4  ;;  %s1391_s13 = int_to_ptr.vmem [resolvable:$false] %s1390_s13 }
  0x92   : > { %1145 = vmatprep.subr.bf16.mxu0 %v1470_v0  ;;  %1165 = vmatprep.subr.bf16.mxu1 %v1470_v0  ;;  %v371_v43 = vld [vmem:[#allocation2] sm:$0xff]  ;;  %368 = vst [vmem:[#allocation2 + $0x28] sm:$0x3] %v355_v36  ;;  %v1809_v48 = vrot.slane %v370_v32, %v1735_v7  ;;  %v1812_v49 = vrot.slane %v370_v32, %v1737_v9  ;;  %s1392_s10 = scalar_lea.vmem %s1391_s13, 1024  ;;  %p1393_p3 = scmp.lt.s32.totalorder %s1955_s20, %s1391_s13 }
  0x93   : > { %v387_v44 = vld [vmem:[#allocation2] sm:$0xfe]  ;;  %v389_v45 = vld [vmem:[#allocation2 + $0x20] sm:$0x1]  ;;  %v383_v50 = vmul.f32 %v378_v24, %v371_v43  ;;  %v1819_v62 = vmul.f32 %v1794_v37, %v1806_v47  ;;  %p1388_p4 = pnand %p1387_p1, %p1653_p6  ;;  %p1394_p7 = scmp.lt.s32.totalorder %s1392_s10, %s1386_s29 }
  0x94   : > { %v399_v51 = vmul.f32 %v394_v16, %v387_v44  ;;  %v403_v52 = vmul.f32 %v394_v16, %v389_v45  ;;  %v430_v53 = vld [vmem:[#allocation2] sm:$0xfc]  ;;  %v432_v54 = vld [vmem:[#allocation2 + $0x20] sm:$0x3]  ;;  %v372_v22 = vld [vmem:[#allocation2 + $0x8] sm:$0xff] }
  0x95   : > { %1146 = vmatpush3.bf16.msra.mxu0 %v1267_v17  ;;  %1166 = vmatpush3.bf16.msra.mxu1 %v1267_v17  ;;  %v473_v55 = vld [vmem:[#allocation2] sm:$0xf8]  ;;  %v442_v56 = vmul.f32 %v437_v18, %v430_v53  ;;  %v446_v57 = vmul.f32 %v437_v18, %v432_v54  ;;  %v475_v58 = vld [vmem:[#allocation2 + $0x20] sm:$0x7]  ;;  %v388_v28 = vld [vmem:[#allocation2 + $0x8] sm:$0xfe]  ;;  %p1389_p8 = pneg %p1388_p4  ;;  %p1395_p10 = por %p1394_p7, %p1393_p3 }
  0x96   : > { %1147 = vmatprep.subr.bf16.mxu0 %v1470_v0  ;;  %1167 = vmatprep.subr.bf16.mxu1 %v1470_v0  ;;  %v485_v59 = vmul.f32 %v1754_v19, %v473_v55  ;;  %v516_v60 = vld [vmem:[#allocation2] sm:$0xf0]  ;;  %v518_v61 = vld [vmem:[#allocation2 + $0x20] sm:$0xf]  ;;  %v412_v63 = vrot.slane %v399_v51, 1  ;;  %v418_v1 = vrot.slane %v403_v52, 1  ;;  %v489_v2 = vmul.f32 %v1754_v19, %v475_v58 }
  0x97   : > { %v528_v3 = vmul.f32 %v1757_v20, %v516_v60  ;;  %v455_v8 = vrot.slane %v442_v56, 2  ;;  %v461_v12 = vrot.slane %v446_v57, 2  ;;  %v532_v15 = vmul.f32 %v1757_v20, %v518_v61  ;;  %v474_v55 = vld [vmem:[#allocation2 + $0x8] sm:$0xf8]  ;;  %p1396_p13 = pnand %p1395_p10, %p1389_p8 }
  0x98   : > { %v498_v14 = vrot.slane %v485_v59, 3  ;;  %v414_v16 = vsel %vm411_vm2, %v412_v63, %v413_v35  ;;  %v419_v17 = vsel %vm411_vm2, %v413_v35, %v418_v1  ;;  %v504_v18 = vrot.slane %v489_v2, 3  ;;  %v1271_v35 = vld [vmem:[#allocation8 + $0x38] sm:$0xff]  }
  0x99   : > { %1148 = vmatpush3.bf16.msra.mxu0 %v1268_v30  ;;  %1168 = vmatpush3.bf16.msra.mxu1 %v1268_v30  ;;  %v541_v19 = vrot.slane %v528_v3, 4  ;;  %v426_v23 = vadd.f32 %v414_v16, %v383_v50  ;;  %v428_v24 = vadd.f32 %v419_v17, %v385_v34  ;;  %v457_v25 = vsel %vm454_vm3, %v455_v8, %v456_v39  ;;  %v390_v36 = vld [vmem:[#allocation2 + $0x28] sm:$0x1] }
  0x9a   : > { %1149 = vmatprep.subr.bf16.mxu0 %v1470_v0  ;;  %1169 = vmatprep.subr.bf16.mxu1 %v1470_v0  ;;  %v462_v27 = vsel %vm454_vm3, %v456_v39, %v461_v12  ;;  %v500_v20 = vsel %vm497_vm4, %v498_v14, %v499_v40  ;;  %v505_v30 = vsel %vm497_vm4, %v499_v40, %v504_v18  ;;  %v547_v32 = vrot.slane %v532_v15, 4  ;;  %v433_v45 = vld [vmem:[#allocation2 + $0x28] sm:$0x3]  ;;  %v517_v12 = vld [vmem:[#allocation2 + $0x8] sm:$0xf0] }
  0x9b   : > { %v543_v31 = vsel %vm540_vm5, %v541_v19, %v542_v46  ;;  %v469_v43 = vadd.f32 %v457_v25, %v426_v23  ;;  %v471_v44 = vadd.f32 %v462_v27, %v428_v24  ;;  %v384_v34 = vmul.f32 %v1794_v37, %v372_v22  ;;  %v476_v1 = vld [vmem:[#allocation2 + $0x28] sm:$0x7] }
  0x9c   : > { %v548_v39 = vsel %vm540_vm5, %v542_v46, %v547_v32  ;;  %v400_v40 = vmul.f32 %v1799_v41, %v388_v28  ;;  %v402_v50 = vmul.f32 %v1799_v41, %v1806_v47  ;;  %v404_v53 = vmul.f32 %v1799_v41, %v390_v36  ;;  %v519_v18 = vld [vmem:[#allocation2 + $0x28] sm:$0xf] }
  0x9d   : > { %1150 = vmatpush3.bf16.msra.mxu0 %v1269_v38  ;;  %1170 = vmatpush3.bf16.msra.mxu1 %v1269_v38  ;;  %v431_v38 = vld [vmem:[#allocation2 + $0x8] sm:$0xfc]  ;;  %v512_v51 = vadd.f32 %v500_v20, %v469_v43  ;;  %v514_v52 = vadd.f32 %v505_v30, %v471_v44  ;;  %v445_v57 = vmul.f32 %v1802_v42, %v1806_v47 }
  0x9e   : > { %1151 = vmatprep.subr.bf16.mxu0 %v1470_v0  ;;  %1171 = vmatprep.subr.bf16.mxu1 %v1470_v0  ;;  %v443_v54 = vmul.f32 %v1802_v42, %v431_v38  ;;  %v415_v37 = vrot.slane %v400_v40, 1  ;;  %v416_v56 = vrot.slane %v402_v50, 1  ;;  %v420_v59 = vrot.slane %v404_v53, 1 }
  0x9f   : > { %v555_v46 = vadd.f32 %v543_v31, %v512_v51  ;;  %v557_v58 = vadd.f32 %v548_v39, %v514_v52  ;;  %v459_v63 = vrot.slane %v445_v57, 2  ;;  %v486_v2 = vmul.f32 %v1809_v48, %v474_v55 }
  0xa0   : > { %v458_v60 = vrot.slane %v443_v54, 2  ;;  %v417_v61 = vsel %vm411_vm2, %v415_v37, %v416_v56  ;;  %v421_v8 = vsel %vm411_vm2, %v416_v56, %v420_v59  ;;  %v488_v17 = vmul.f32 %v1809_v48, %v1806_v47  ;;  %v1105_v54 = vld [vmem:[#allocation9] ss:$0 sm:$0xff] }
  0xa1   : > { %1152 = vmatpush3.bf16.msra.mxu0 %v1270_v4  ;;  %1172 = vmatpush3.bf16.msra.mxu1 %v1270_v4  ;;  %v571_v3 = vadd.f32 %v1789_v33, %v555_v46  ;;  %v573_v4 = vadd.f32 %v1789_v33, %v557_v58  ;;  %v429_v14 = vadd.f32 %v421_v8, %v1819_v62  ;;  %v501_v25 = vrot.slane %v486_v2, 3 }
  0xa2   : > { %1153 = vmatprep.subr.bf16.mxu0 %v1470_v0  ;;  %1173 = vmatprep.subr.bf16.mxu1 %v1470_v0  ;;  %v447_v0 = vmul.f32 %v1802_v42, %v433_v45  ;;  %v427_v42 = vadd.f32 %v417_v61, %v384_v34  ;;  %v460_v15 = vsel %vm454_vm3, %v458_v60, %v459_v63  ;;  %v502_v27 = vrot.slane %v488_v17, 3 }
  0xa3   : > { %v575_v19 = vmax.f32 %v571_v3, 0.0  ;;  %v577_v22 = vmax.f32 %v573_v4, 0.0  ;;  %v490_v24 = vmul.f32 %v1809_v48, %v476_v1  ;;  %v529_v28 = vmul.f32 %v1812_v49, %v517_v12  ;;  %v761_v4 = vld [vmem:[%s2005_s5 + $0x8] sm:$0x1f] }
  0xa4   : > { %v463_v41 = vrot.slane %v447_v0, 2  ;;  %v470_v23 = vadd.f32 %v460_v15, %v427_v42  ;;  %v531_v30 = vmul.f32 %v1812_v49, %v1806_v47  ;;  %v533_v31 = vmul.f32 %v1812_v49, %v519_v18 }
  0xa5   : > { %1154 = vmatpush3.bf16.msra.mxu0 %v1271_v35  ;;  %1174 = vmatpush3.bf16.msra.mxu1 %v1271_v35  ;;  %v596_v20 = vpack.c.bf16 %v577_v22, %v575_v19  ;;  %v506_v62 = vrot.slane %v490_v24, 3  ;;  %v503_v32 = vsel %vm497_vm4, %v501_v25, %v502_v27  ;;  %v544_v36 = vrot.slane %v529_v28, 4 }
  0xa6   : > { %v464_v16 = vsel %vm454_vm3, %v459_v63, %v463_v41  ;;  %v513_v35 = vadd.f32 %v503_v32, %v470_v23  ;;  %v545_v48 = vrot.slane %v531_v30, 4  ;;  %v549_v43 = vrot.slane %v533_v31, 4 }
  0xa7   : > { %v472_v33 = vadd.f32 %v464_v16, %v429_v14  ;;  %v507_v38 = vsel %vm497_vm4, %v502_v27, %v506_v62  ;;  %v568_v34 = vrot.slane %v1772_v26, %v1731_v5  ;;  %v760_v26 = vld [vmem:[%s2005_s5] sm:$0x1f]  ;;  %v1886_v19 = vrot.slane %v761_v4, %v1731_v5 }
  0xa8   : > { %1156 = vmatmul.mubr.bf16.vlgmr.msra.gmra.mrb[0].mxu0 %v596_v20  ;;  %v546_v45 = vsel %vm540_vm5, %v544_v36, %v545_v48  ;;  %v550_v39 = vsel %vm540_vm5, %v545_v48, %v549_v43  ;;  %v785_v61 = vrot.slane %v760_v26, %v1731_v5  ;;  %v827_v63 = vrot.slane %v760_v26, %v1733_v6 }
  0xa9   : > { %v515_v44 = vadd.f32 %v507_v38, %v472_v33  ;;  %v556_v47 = vadd.f32 %v546_v45, %v513_v35  ;;  %v869_v41 = vrot.slane %v760_v26, %v1735_v7  ;;  %v1873_v1 = vrot.slane %v760_v26, %v1737_v9 }
  0xaa   : > { %v769_v15 = vrot.slane %v760_v26, %v1747_v13  ;;  %v1889_v22 = vrot.slane %v761_v4, %v1733_v6  ;;  %v1892_v25 = vrot.slane %v761_v4, %v1735_v7  ;;  %v1896_v32 = vrot.slane %v761_v4, %v1737_v9 }
  0xab   : > { %v558_v40 = vadd.f32 %v550_v39, %v515_v44  ;;  %v572_v49 = vadd.f32 %v568_v34, %v556_v47  ;;  %v773_v36 = vrot.slane %v761_v4, %v1747_v13 }
  0xad   : > { %v574_v50 = vadd.f32 %v568_v34, %v558_v40  ;;  %v576_v51 = vmax.f32 %v572_v49, 0.0 }
  0xaf   : > { %v578_v52 = vmax.f32 %v574_v50, 0.0 }
  0xb1   : > { %v705_v53 = vpack.c.bf16 %v578_v52, %v576_v51 }
  0xb3   : > { %1176 = vmatmul.mubr.bf16.vlgmr.msra.gmra.mrb[0].mxu1 %v705_v53 }
 0x17b   : > { %v685_v55 = vpop.f32.mrb[0].mxu0 }
 0x17c   : > { %v686_v37 = vadd.f32 %v1105_v54, %v685_v55  ;;  %v1157_v56 = vpop.f32.mrb[1].mxu0 }
 0x17d   : > { %v688_v57 = vpop.f32.mrb[2].mxu0 }
 0x17e   : > { %v692_v0 = vmax.f32 %v686_v37, 0.0  ;;  %v689_v46 = vadd.f32 %v1105_v54, %v688_v57  ;;  %v1158_v58 = vpop.f32.mrb[3].mxu0  ;;  %v1903_v37 = vld [vmem:[%s2006_s6] sm:$0x3] }
 0x180   : > { %v696_v59 = vrot.slane %v692_v0, 6  ;;  %v693_v60 = vmax.f32 %v689_v46, 0.0 }
 0x182   : > { %702 = vst [vmem:[#allocation2] sm:$0xfc] %v696_v59  ;;  %v697_v2 = vrot.slane %v693_v60, 6 }
 0x184   : > { %v698_v3 = vsel %vm350_vm1, %v696_v59, %v697_v2  ;;  %704 = vst [vmem:[#allocation2 + $0x20] sm:$0x3] %v697_v2 }
 0x185   : > { %v792_v8 = vmul.f32 %v785_v61, %v698_v3  ;;  %v834_v42 = vmul.f32 %v827_v63, %v698_v3  ;;  %v1879_v12 = vmul.f32 %v869_v41, %v698_v3  ;;  %v1883_v16 = vmul.f32 %v1873_v1, %v698_v3 }
 0x186   : > { %v740_v14 = vpop.f32.mrb[0].mxu1  ;;  %v776_v6 = vmul.f32 %v769_v15, %v698_v3  ;;  %v1914_v3 = vrot.slane %v1903_v37, %v1747_v13 }
 0x187   : > { %v741_v17 = vadd.f32 %v1105_v54, %v740_v14  ;;  %v1177_v18 = vpop.f32.mrb[1].mxu1  ;;  %v803_v24 = vrot.slane %v792_v8, 1  ;;  %v845_v33 = vrot.slane %v834_v42, 2  ;;  %v887_v31 = vrot.slane %v1879_v12, 3 }
 0x188   : > { %v743_v23 = vpop.f32.mrb[2].mxu1  ;;  %v929_v18 = vrot.slane %v1883_v16, 4 }
 0x189   : > { %v747_v27 = vmax.f32 %v741_v17, 0.0  ;;  %v744_v28 = vadd.f32 %v1105_v54, %v743_v23  ;;  %v1178_v20 = vpop.f32.mrb[3].mxu1  ;;  %v762_v62 = vld [vmem:[#allocation2] sm:$0xff] }
 0x18a   : > { %v778_v30 = vld [vmem:[#allocation2] sm:$0xfe]  ;;  %v774_v40 = vmul.f32 %v769_v15, %v762_v62 }
 0x18b   : > { %v790_v38 = vmul.f32 %v785_v61, %v778_v30  ;;  %v820_v35 = vld [vmem:[#allocation2] sm:$0xfc]  ;;  %v751_v44 = vrot.slane %v747_v27, 6  ;;  %v748_v7 = vmax.f32 %v744_v28, 0.0  ;;  %v780_v34 = vld [vmem:[#allocation2 + $0x20] sm:$0x1] }
 0x18c   : > { %v862_v48 = vld [vmem:[#allocation2] sm:$0xf8]  ;;  %v822_v45 = vld [vmem:[#allocation2 + $0x20] sm:$0x3]  ;;  %v832_v39 = vmul.f32 %v827_v63, %v820_v35  ;;  %v794_v49 = vmul.f32 %v785_v61, %v780_v34 }
 0x18d   : > { %v904_v43 = vld [vmem:[#allocation2] sm:$0xf0]  ;;  %v874_v47 = vmul.f32 %v869_v41, %v862_v48  ;;  %v802_v50 = vrot.slane %v790_v38, 1  ;;  %v836_v51 = vmul.f32 %v827_v63, %v822_v45  ;;  %v864_v52 = vld [vmem:[#allocation2 + $0x20] sm:$0x7]  ;;  %v752_v9 = vrot.slane %v748_v7, 6 }
 0x18e   : > { %757 = vst [vmem:[#allocation2 + $0x8] sm:$0xfc] %v751_v44  ;;  %v844_v53 = vrot.slane %v832_v39, 2  ;;  %v916_v55 = vmul.f32 %v1873_v1, %v904_v43  ;;  %v808_v57 = vrot.slane %v794_v49, 1  ;;  %v878_v0 = vmul.f32 %v869_v41, %v864_v52  ;;  %v906_v12 = vld [vmem:[#allocation2 + $0x20] sm:$0xf] }
 0x18f   : > { %v886_v54 = vrot.slane %v874_v47, 3  ;;  %v804_v56 = vsel %vm411_vm2, %v802_v50, %v803_v24  ;;  %v850_v26 = vrot.slane %v836_v51, 2  ;;  %v753_v46 = vsel %vm350_vm1, %v751_v44, %v752_v9  ;;  %759 = vst [vmem:[#allocation2 + $0x28] sm:$0x3] %v752_v9 }
 0x190   : > { %v816_v58 = vadd.f32 %v804_v56, %v774_v40  ;;  %v846_v59 = vsel %vm454_vm3, %v844_v53, %v845_v33  ;;  %v793_v61 = vmul.f32 %v1886_v19, %v753_v46  ;;  %v809_v63 = vsel %vm411_vm2, %v803_v24, %v808_v57 }
 0x191   : > { %v888_v60 = vsel %vm497_vm4, %v886_v54, %v887_v31  ;;  %v835_v2 = vmul.f32 %v1889_v22, %v753_v46  ;;  %v818_v4 = vadd.f32 %v809_v63, %v776_v6  ;;  %v851_v41 = vsel %vm454_vm3, %v845_v33, %v850_v26 }
 0x192   : > { %v858_v8 = vadd.f32 %v846_v59, %v816_v58  ;;  %v877_v42 = vmul.f32 %v1892_v25, %v753_v46  ;;  %v806_v14 = vrot.slane %v793_v61, 1  ;;  %v892_v15 = vrot.slane %v878_v0, 3 }
 0x193   : > { %v919_v17 = vmul.f32 %v1896_v32, %v753_v46  ;;  %v848_v23 = vrot.slane %v835_v2, 2  ;;  %v860_v24 = vadd.f32 %v851_v41, %v818_v4  ;;  %v928_v28 = vrot.slane %v916_v55, 4 }
 0x194   : > { %v900_v27 = vadd.f32 %v888_v60, %v858_v8  ;;  %v777_v13 = vmul.f32 %v773_v36, %v753_v46  ;;  %v890_v6 = vrot.slane %v877_v42, 3  ;;  %v893_v33 = vsel %vm497_vm4, %v887_v31, %v892_v15 }
 0x195   : > { %v763_v20 = vld [vmem:[#allocation2 + $0x8] sm:$0xff]  ;;  %v920_v38 = vmul.f32 %v1873_v1, %v906_v12  ;;  %v902_v44 = vadd.f32 %v893_v33, %v860_v24  ;;  %v932_v7 = vrot.slane %v919_v17, 4  ;;  %v930_v31 = vsel %vm540_vm5, %v928_v28, %v929_v18 }
 0x196   : > { %v779_v62 = vld [vmem:[#allocation2 + $0x8] sm:$0xfe]  ;;  %v775_v34 = vmul.f32 %v773_v36, %v763_v20  ;;  %v781_v45 = vld [vmem:[#allocation2 + $0x28] sm:$0x1]  ;;  %v942_v4 = vadd.f32 %v930_v31, %v900_v27  ;;  %v955_v42 = vrot.slane %v1903_v37, %v1731_v5 }
 0x197   : > { %v821_v30 = vld [vmem:[#allocation2 + $0x8] sm:$0xfc]  ;;  %v791_v35 = vmul.f32 %v1886_v19, %v779_v62  ;;  %v823_v39 = vld [vmem:[#allocation2 + $0x28] sm:$0x3]  ;;  %v795_v1 = vmul.f32 %v1886_v19, %v781_v45  ;;  %v934_v60 = vrot.slane %v920_v38, 4 }
 0x198   : > { %v833_v48 = vmul.f32 %v1889_v22, %v821_v30  ;;  %v863_v43 = vld [vmem:[#allocation2 + $0x8] sm:$0xf8]  ;;  %v865_v47 = vld [vmem:[#allocation2 + $0x28] sm:$0x7]  ;;  %v837_v51 = vmul.f32 %v1889_v22, %v823_v39  ;;  %v958_v17 = vadd.f32 %v1914_v3, %v942_v4 }
 0x199   : > { %v905_v16 = vld [vmem:[#allocation2 + $0x8] sm:$0xf0]  ;;  %v875_v40 = vmul.f32 %v1892_v25, %v863_v43  ;;  %v805_v50 = vrot.slane %v791_v35, 1  ;;  %v907_v9 = vld [vmem:[#allocation2 + $0x28] sm:$0xf]  ;;  %v879_v53 = vmul.f32 %v1892_v25, %v865_v47  ;;  %v810_v57 = vrot.slane %v795_v1, 1 }
 0x19a   : > { %v917_v49 = vmul.f32 %v1896_v32, %v905_v16  ;;  %v847_v52 = vrot.slane %v833_v48, 2  ;;  %v921_v36 = vmul.f32 %v1896_v32, %v907_v9  ;;  %v852_v0 = vrot.slane %v837_v51, 2 }
 0x19b   : > { %v889_v54 = vrot.slane %v875_v40, 3  ;;  %v807_v56 = vsel %vm411_vm2, %v805_v50, %v806_v14  ;;  %v894_v58 = vrot.slane %v879_v53, 3  ;;  %v811_v59 = vsel %vm411_vm2, %v806_v14, %v810_v57 }
 0x19c   : > { %v931_v55 = vrot.slane %v917_v49, 4  ;;  %v849_v26 = vsel %vm454_vm3, %v847_v52, %v848_v23  ;;  %v817_v46 = vadd.f32 %v807_v56, %v775_v34  ;;  %v853_v25 = vsel %vm454_vm3, %v848_v23, %v852_v0 }
 0x19d   : > { %v891_v19 = vsel %vm497_vm4, %v889_v54, %v890_v6  ;;  %v936_v61 = vrot.slane %v921_v36, 4  ;;  %v819_v32 = vadd.f32 %v811_v59, %v777_v13  ;;  %v895_v2 = vsel %vm497_vm4, %v890_v6, %v894_v58 }
 0x19e   : > { %v933_v22 = vsel %vm540_vm5, %v931_v55, %v932_v7  ;;  %v859_v63 = vadd.f32 %v849_v26, %v817_v46  ;;  %v935_v41 = vsel %vm540_vm5, %v929_v18, %v934_v60  ;;  %v966_v20 = vadd.f32 %v958_v17, %v1742_v10 }
 0x19f   : > { %v937_v8 = vsel %vm540_vm5, %v932_v7, %v936_v61  ;;  %v861_v12 = vadd.f32 %v853_v25, %v819_v32  ;;  %v944_v15 = vadd.f32 %v935_v41, %v902_v44 }
 0x1a0   : > { %v901_v14 = vadd.f32 %v891_v19, %v859_v63  ;;  %970 = vst [vmem:[%s336_s17] sm:$0xff] %v966_v20 }
 0x1a1   : > { %v903_v23 = vadd.f32 %v895_v2, %v861_v12  ;;  %v960_v28 = vadd.f32 %v1914_v3, %v944_v15 }
 0x1a2   : > { %v943_v24 = vadd.f32 %v933_v22, %v901_v14 }
 0x1a3   : > { %v945_v27 = vadd.f32 %v937_v8, %v903_v23  ;;  %v968_v13 = vadd.f32 %v960_v28, %v1745_v11 }
 0x1a4   : > { %v959_v18 = vadd.f32 %v955_v42, %v943_v24 }
 0x1a5   : > { %v961_v5 = vadd.f32 %v955_v42, %v945_v27  ;;  %972 = vst [vmem:[%s336_s17 + $0x10] sm:$0xff] %v968_v13 }
 0x1a6   : > { %v967_v37 = vadd.f32 %v959_v18, %v1760_v21 }
 0x1a7   : > { %v969_v10 = vadd.f32 %v961_v5, %v1780_v29 }
 0x1a8   : > { %971 = vst [vmem:[%s336_s17 + $0x8] sm:$0xff] %v967_v37 }
 0x1a9   : > { %973 = vst [vmem:[%s336_s17 + $0x18] sm:$0xff] %v969_v10 }
 0x1aa   : > { %1399 = shalt.err (!%p1396_p13)
}
 0x1ab   : > { %s1400_s12 = scalar_lea.hbm %s1953_s9, 512  ;;  %s1404_s17 = scalar_lea.hbm %s2007_s7, 1024 }
 0x1ac   : > { %p1401_p0 = scmp.ne.s32.totalorder %s1953_s9, %s1400_s12  ;;  %p1405_p9 = scmp.lt.u32.totalorder %s1953_s9, %s2007_s7 }
 0x1ad   : > { %p1406_p12 = scmp.lt.u32.totalorder %s1404_s17, %s1400_s12  ;;  %p1408_p1 = scmp.lt.u32.totalorder %s1400_s12, %s1953_s9 }
 0x1ae   : > { %p1402_p5 = pnand %p1401_p0, %p1653_p6 }
 0x1af   : > { %p1407_p2 = por %p1406_p12, %p1405_p9 }
 0x1b0   : > { %p1403_p11 = pneg %p1402_p5 }
 0x1b1   : > { %p1409_p4 = por %p1408_p1, %p1407_p2 }
 0x1b3   : > { %p1410_p8 = pnand %p1409_p4, %p1403_p11 }
 0x1b5   : > { %1413 = shalt.err (!%p1410_p8)
}
 0x1b6   : > { %s1473_s30 = smov 256   ;;  %s1474_s29 = smov 16  }
 0x1b7   : > { %1193 = dma.vmem_to_hbm [thread:$0]  (%p1653_p6), %s1955_s20, 512, %s1953_s9, %s975_s28, %s1473_s30, %s1473_s30, %s1474_s29  }
 0x1b8 PF: > { %s1003_s11 = sand.u32 1, %s1448_s24   ;;  %p2025_p3 = scmp.ne.s32.totalorder %s2012_s8, 0 }
 0x1b9   : > { %p2026_p7 = scmp.ge.s32.totalorder %s1460_s27, 2  ;;  %s1004_s13 = scalar_lea.sflag [#allocation5], %s1003_s11 }
 0x1bb   : > { %p1210_p10 = pnand %p2026_p7, %p2025_p3 }
 0x1bd   : > { %1443 = dma.done.wait (!%p1210_p10), %s1004_s13, 512  }
 0x1be   : > { %1445 = vsyncadd (!%p1210_p10), %s1004_s13, 4294966784  ;;  %p22_p13 = scmp.ge.s32.totalorder %s1639_s22, 4   ;;  %s2027_s24 = smov %s1452_s25 }
 0x1bf   : > { %s2028_s25 = smov %s1456_s26  ;;  %s2029_s26 = smov %s1649_s18 }
 0x1c0   : > { %s2030_s27 = smov %s1639_s22  ;;  %24 = sbr.rel (!%p22_p13) target bundleno = 7 (0x7), region = 105 }
 0x1c7   :  { %1009 = vsyncpa [#allocation4], 1 }
 0x1c8   :  { %1011 = vsyncpa [#allocation4 + $0x1], 1 }
 0x1c9   :  { %1012 = vsyncpa [#allocation7], 1 }
 0x1ca   :  { %1013 = vsyncpa [#allocation10], 1 }
 0x1cb   :  { %1014 = vsyncpa [#allocation5], 1 }
 0x1cc   :  { %1016 = vsyncpa [#allocation5 + $0x1], 1 }

</bundles_post_ra>
